<compile_context>
chip_gen: v7x
topology: tpu7x:2x2x1
jax: 0.10.0
libtpu: 0.0.40
codegen_flags: <defaults>
</compile_context>

<pallas_src>
import functools

import jax
import jax.numpy as jnp
from jax import lax
from jax.experimental import pallas as pl
from jax.experimental.pallas import tpu as pltpu


# ---------------------------------------------------------------------------
# Kernels
# ---------------------------------------------------------------------------

def _smearing_kernel_transposed(dist_ref, out_ref, *, coeff, start, delta,
                                num_gaussians, g_pad):
    """Lane-dense variant.

    dist_ref : (1, TILE_N)   distances along lanes (contiguous HBM->VMEM DMA)
    out_ref  : (TILE_N, G)   output block, (N, G) contract layout
    """
    d = dist_ref[...]                                              # (1, TILE_N)
    # Offset column rebuilt in-kernel (compile-time constant, no DMA).
    g_idx = lax.broadcasted_iota(jnp.int32, (g_pad, 1), 0)
    offset = g_idx.astype(jnp.float32) * delta + start             # (g_pad, 1)
    diff = d - offset                                              # (g_pad, TILE_N)
    vals = jnp.exp(coeff * (diff * diff))                          # dense vregs (EUP)
    # Single XLU transpose into the output layout, then drop the padded rows.
    out_ref[...] = jnp.transpose(vals, (1, 0))[:, :num_gaussians]


def _smearing_kernel_rows(dist_ref, out_ref, *, coeff, start, delta,
                          num_gaussians):
    """Fallback: distances arrive as a (TILE_N, 1) column block (old layout)."""
    g_idx = lax.broadcasted_iota(jnp.int32, (1, num_gaussians), 1)
    offset = g_idx.astype(jnp.float32) * delta + start             # (1, G)
    diff = dist_ref[...] - offset                                  # (TILE_N, G)
    out_ref[...] = jnp.exp(coeff * (diff * diff))


# ---------------------------------------------------------------------------
# Wrapper
# ---------------------------------------------------------------------------

def gaussian_smearing(dist, start=0.0, stop=5.0, num_gaussians=50, *,
                      tile_n=8192, min_grid_steps=8, transposed_compute=True):
    """Pallas TPU implementation of GaussianSmearing.forward.

    dist: any shape; flattened like torch `.view(-1, 1)`.
    returns: (N, num_gaussians) float32, identical semantics to the PyTorch module.
    """
    if num_gaussians < 2:
        raise ValueError("num_gaussians must be >= 2")

    # Analytic spacing: no device->host sync, wrapper stays jit-able.
    delta = (float(stop) - float(start)) / (num_gaussians - 1)
    coeff = -0.5 / (delta * delta)

    dist_flat = jnp.reshape(dist, (-1,)).astype(jnp.float32)
    n = dist_flat.shape[0]
    g = num_gaussians

    # ---- tile-size selection ------------------------------------------------
    TILE_N_CAP = 8192                       # ~16 MiB total VMEM, fits v5e/v6e/v7x
    tile_n = min(int(tile_n), TILE_N_CAP)
    # Keep >= min_grid_steps grid steps (>= 3-4 per v7x TensorCore) so the
    # input DMA / compute / output writeback actually pipeline.
    tile_n = min(tile_n, pl.cdiv(n, max(1, int(min_grid_steps))))
    tile_n = max(128, ((tile_n + 127) // 128) * 128)   # lane-dim multiple of 128

    grid = (pl.cdiv(n, tile_n),)            # partial final block masked by Pallas

    cost = pl.CostEstimate(
        flops=3 * n * g,                    # sub + 2 mul per element
        transcendentals=n * g,              # one exp per element
        bytes_accessed=4 * n + 4 * n * g,   # read dist, write result
    )

    out_shape = jax.ShapeDtypeStruct((n, g), jnp.float32)
    out_spec = pl.BlockSpec((tile_n, g), lambda i: (i, 0))
    cparams = pltpu.CompilerParams(
        dimension_semantics=("parallel",),
        vmem_limit_bytes=32 * 1024 * 1024,
    )

    if transposed_compute:
        g_pad = max(8, ((g + 7) // 8) * 8)            # sublane multiple for exp/transpose
        kernel = functools.partial(
            _smearing_kernel_transposed, coeff=coeff, start=float(start),
            delta=delta, num_gaussians=g, g_pad=g_pad)
        dist_in = dist_flat.reshape(1, n)              # free reshape, contiguous
        in_spec = pl.BlockSpec((1, tile_n), lambda i: (0, i))
    else:
        kernel = functools.partial(
            _smearing_kernel_rows, coeff=coeff, start=float(start),
            delta=delta, num_gaussians=g)
        dist_in = dist_flat.reshape(n, 1)
        in_spec = pl.BlockSpec((tile_n, 1), lambda i: (i, 0))

    return pl.pallas_call(
        kernel,
        out_shape=out_shape,
        grid_spec=pltpu.PrefetchScalarGridSpec(
            num_scalar_prefetch=0,
            grid=grid,
            in_specs=[in_spec],
            out_specs=out_spec,
        ),
        compiler_params=cparams,
        cost_estimate=cost,
    )(dist_in)


def gaussian_smearing_ref(dist, start=0.0, stop=5.0, num_gaussians=50):
    offset = jnp.linspace(start, stop, num_gaussians, dtype=jnp.float32)
    delta = (float(stop) - float(start)) / (num_gaussians - 1)
    coeff = -0.5 / (delta * delta)
    d = jnp.reshape(dist, (-1, 1)).astype(jnp.float32) - offset.reshape(1, -1)
    return jnp.exp(coeff * d * d)


# ---------------------------------------------------------------------------
# Demo / self-test
# ---------------------------------------------------------------------------

if __name__ == "__main__":
    key = jax.random.PRNGKey(0)
    k1, k2 = jax.random.split(key)

    # (10, 20) -> 200 rows, like the PyTorch `.view(-1, 1)`.
    dist = jax.random.uniform(k1, (10, 20), dtype=jnp.float32,
                              minval=0.0, maxval=5.0)
    # Second case with a multi-step grid and a ragged final block.
    dist2 = jax.random.uniform(k2, (3, 1000), dtype=jnp.float32,
                               minval=0.0, maxval=5.0)

    def run(d, **kw):
        return jax.block_until_ready(gaussian_smearing(d, **kw))

    try:
        out = run(dist)
        use_transposed = True
    except Exception:
        # Fallback for Mosaic builds without 2-D transpose support: same math,
        # old (tile_n, 1) input layout (correct, just slower input DMA).
        out = run(dist, transposed_compute=False)
        use_transposed = False

    ref = gaussian_smearing_ref(dist)
    assert out.shape == (200, 50), out.shape
    assert jnp.allclose(out, ref, atol=2e-5, rtol=2e-5), "mismatch vs reference"

    out2 = run(dist2, transposed_compute=use_transposed)
    ref2 = gaussian_smearing_ref(dist2)
    assert out2.shape == (3000, 50), out2.shape
    assert jnp.allclose(out2, ref2, atol=2e-5, rtol=2e-5), "mismatch vs reference (case 2)"

    print("KERNEL_OK")
</pallas_src>

<mosaic_0001>
module attributes {stable_mosaic.version = 11 : i64} {
  func.func @_smearing_kernel_transposed(%arg0: i32, %arg1: memref<1x128xf32, #tpu.memory_space<vmem>>, %arg2: memref<128x50xf32, #tpu.memory_space<vmem>>) attributes {dimension_semantics = [#tpu.dimension_semantics<parallel>], iteration_bounds = array<i64: 2>, scalar_prefetch = 0 : i64, scratch_operands = 0 : i64, tpu.core_type = #tpu.core_type<tc>, window_params = [{transform_indices = @transform_0, window_bounds = array<i64: 1, 128>}, {transform_indices = @transform_1, window_bounds = array<i64: 128, 50>}]} {
    %c0 = arith.constant 0 : index
    %c0_0 = arith.constant 0 : index
    %0 = vector.load %arg1[%c0, %c0_0] : memref<1x128xf32, #tpu.memory_space<vmem>>, vector<1x128xf32>
    %1 = tpu.iota {dimensions = array<i32: 0>} : vector<56x1xi32>
    %2 = arith.sitofp %1 : vector<56x1xi32> to vector<56x1xf32>
    %cst = arith.constant 0.10204082 : f32
    %3 = vector.broadcast %cst : f32 to vector<56x1xf32>
    %4 = arith.mulf %2, %3 : vector<56x1xf32>
    %cst_1 = arith.constant 0.000000e+00 : f32
    %5 = vector.broadcast %cst_1 : f32 to vector<56x1xf32>
    %6 = arith.addf %4, %5 : vector<56x1xf32>
    %7 = vector.broadcast %0 : vector<1x128xf32> to vector<56x128xf32>
    %8 = vector.broadcast %6 : vector<56x1xf32> to vector<56x128xf32>
    %9 = arith.subf %7, %8 : vector<56x128xf32>
    %10 = arith.mulf %9, %9 : vector<56x128xf32>
    %cst_2 = arith.constant -4.802000e+01 : f32
    %11 = vector.broadcast %cst_2 : f32 to vector<56x128xf32>
    %12 = arith.mulf %11, %10 : vector<56x128xf32>
    %13 = math.exp %12 : vector<56x128xf32>
    %14 = tpu.transpose %13, [1, 0] : vector<56x128xf32> -> vector<128x56xf32>
    %15 = vector.extract_strided_slice %14 {offsets = [0, 0], sizes = [128, 50], strides = [1, 1]} : vector<128x56xf32> to vector<128x50xf32>
    %c0_3 = arith.constant 0 : index
    %c0_4 = arith.constant 0 : index
    %16 = vector.load %arg2[%c0_3, %c0_4] : memref<128x50xf32, #tpu.memory_space<vmem>>, vector<128x50xf32>
    tpu.vector_store %arg2[%c0_3, %c0_4], %15 {strides = array<i32>} : memref<128x50xf32, #tpu.memory_space<vmem>>, vector<128x50xf32>,
    return
  }
  func.func @transform_0(%arg0: i32) -> (i32, i32) {
    %c0_i32 = arith.constant 0 : i32
    %c0_i32_0 = arith.constant 0 : i32
    return %c0_i32, %arg0 : i32, i32
  }
  func.func @transform_1(%arg0: i32) -> (i32, i32) {
    %c0_i32 = arith.constant 0 : i32
    %c0_i32_0 = arith.constant 0 : i32
    return %arg0, %c0_i32 : i32, i32
  }
}

module attributes {stable_mosaic.version = 11 : i64} {
  func.func @_smearing_kernel_rows(%arg0: i32, %arg1: memref<128x1xf32, #tpu.memory_space<vmem>>, %arg2: memref<128x50xf32, #tpu.memory_space<vmem>>) attributes {dimension_semantics = [#tpu.dimension_semantics<parallel>], iteration_bounds = array<i64: 2>, scalar_prefetch = 0 : i64, scratch_operands = 0 : i64, tpu.core_type = #tpu.core_type<tc>, window_params = [{transform_indices = @transform_0, window_bounds = array<i64: 128, 1>}, {transform_indices = @transform_1, window_bounds = array<i64: 128, 50>}]} {
    %0 = tpu.iota {dimensions = array<i32: 1>} : vector<1x50xi32>
    %1 = arith.sitofp %0 : vector<1x50xi32> to vector<1x50xf32>
    %cst = arith.constant 0.10204082 : f32
    %2 = vector.broadcast %cst : f32 to vector<1x50xf32>
    %3 = arith.mulf %1, %2 : vector<1x50xf32>
    %cst_0 = arith.constant 0.000000e+00 : f32
    %4 = vector.broadcast %cst_0 : f32 to vector<1x50xf32>
    %5 = arith.addf %3, %4 : vector<1x50xf32>
    %c0 = arith.constant 0 : index
    %c0_1 = arith.constant 0 : index
    %6 = vector.load %arg1[%c0, %c0_1] : memref<128x1xf32, #tpu.memory_space<vmem>>, vector<128x1xf32>
    %7 = vector.broadcast %6 : vector<128x1xf32> to vector<128x50xf32>
    %8 = vector.broadcast %5 : vector<1x50xf32> to vector<128x50xf32>
    %9 = arith.subf %7, %8 : vector<128x50xf32>
    %10 = arith.mulf %9, %9 : vector<128x50xf32>
    %cst_2 = arith.constant -4.802000e+01 : f32
    %11 = vector.broadcast %cst_2 : f32 to vector<128x50xf32>
    %12 = arith.mulf %11, %10 : vector<128x50xf32>
    %13 = math.exp %12 : vector<128x50xf32>
    %c0_3 = arith.constant 0 : index
    %c0_4 = arith.constant 0 : index
    %14 = vector.load %arg2[%c0_3, %c0_4] : memref<128x50xf32, #tpu.memory_space<vmem>>, vector<128x50xf32>
    tpu.vector_store %arg2[%c0_3, %c0_4], %13 {strides = array<i32>} : memref<128x50xf32, #tpu.memory_space<vmem>>, vector<128x50xf32>,
    return
  }
  func.func @transform_0(%arg0: i32) -> (i32, i32) {
    %c0_i32 = arith.constant 0 : i32
    %c0_i32_0 = arith.constant 0 : i32
    return %arg0, %c0_i32 : i32, i32
  }
  func.func @transform_1(%arg0: i32) -> (i32, i32) {
    %c0_i32 = arith.constant 0 : i32
    %c0_i32_0 = arith.constant 0 : i32
    return %arg0, %c0_i32 : i32, i32
  }
}

</mosaic_0001>

<bundles_post_ra>
// kernel: tpu_custom_call.1
= control target key start
LH: loop header
LB: loop body
LE: loop exit
PB: predicated region body
PF: predicated region fallthrough
CT: control target
= control target key end

     0   :  { %6 = vsyncpa [#allocation3], 0  ;;  %s1055_s0 = inlined_call_operand.hbm [shape: f32[1,200], index: 0, kind: input, shape index: {}]   ;;  %s1056_s1 = inlined_call_operand.vmem [shape: f32[200,50], index: 1, kind: output, shape index: {}]  }
   0x1   :  { %8 = vsyncpa [#allocation3 + $0x1], 0  ;;  %s819_s6 = smov 0   ;;  %s821_s7 = smov 0  }
   0x2   :  { %s823_s8 = smov 0   ;;  %s825_s9 = smov 0  }
   0x3 LB: > { %s838_s10 = sadd.s32 4294967295, %s774_s9   ;;  %s841_s11 = sadd.s32 1, %s774_s9   ;;  %s774_s9 = sphi %s825_s9, %s1069_s9   ;;  %s770_s8 = sphi %s823_s8, %s1068_s8   ;;  %s766_s7 = sphi %s821_s7, %s1067_s7   ;;  %s762_s6 = sphi %s819_s6, %s1066_s6  }
   0x4   : > { %s18_s12 = ssub.s32 %s774_s9, %s841_s11  ;;  %s21_s13 = sadd.s32 1, %s770_s8 }
   0x5   : > { %p19_p0 = scmp.eq.s32.totalorder %s18_s12, 0  ;;  %p28_p1 = scmp.ne.s32.totalorder %s770_s8, %s766_s7 }
   0x6   : > { %p29_p2 = scmp.eq.s32.totalorder %s774_s9, 0  ;;  %p34_p3 = scmp.ne.s32.totalorder %s766_s7, %s762_s6 }
   0x7   : > { %s851_s14 = scalar_select %p19_p0, %s770_s8, %s21_s13  }
   0x8   : > { %p30_p4 = por %p29_p2, %p28_p1  ;;  %p35_p5 = scmp.eq.s32.totalorder %s838_s10, 0 }
   0x9   : > { %p58_p6 = scmp.eq.s32.totalorder %s838_s10, 1  ;;  %p566_p8 = scmp.lt.s32.totalorder %s774_s9, 2 }
   0xa   : > { %p855_p7 = por %p35_p5, %p34_p3  ;;  %s84_s17 = sand.u32 1, %s770_s8  }
   0xb   : > { %p860_p9 = por %p58_p6, %p28_p1  ;;  %s536_s18 = sshll.u32 %s774_s9, 4 }
   0xc   : > { %s87_s19 = scalar_lea.vmem [#allocation2], %s84_s17  ;;  %s869_s23 = scalar_lea.hbm %s1055_s0, %s536_s18 }
   0xd   : > { %s1058_s16 = scalar_select %p860_p9, 1, 0 }
   0xe   : > { %s94_s20 = sshll.u32 %s87_s19, 4  ;;  %p873_p10 = pnand %p566_p8, %p30_p4  ;;  %s871_s20 = int_to_ptr.vmem [resolvable:$true] %s94_s20 }
   0xf   : > { %s85_s25 = scalar_lea.sflag [#allocation3], %s84_s17  ;;  %s678_s26 = scalar_lea.hbm %s869_s23, 16 }
  0x10   : > { %p679_p13 = scmp.ne.s32.totalorder %s869_s23, %s678_s26  ;;  %p680_p0 = pneg %p873_p10 }
  0x11   : > { %s683_s29 = scalar_lea.hbm %s1055_s0, 32  ;;  %p684_p3 = scmp.lt.u32.totalorder %s869_s23, %s1055_s0 }
  0x12   : > { %p681_p1 = pnand %p680_p0, %p679_p13  ;;  %p685_p4 = scmp.lt.u32.totalorder %s683_s29, %s678_s26 }
  0x13   : > { %p687_p6 = scmp.lt.u32.totalorder %s678_s26, %s869_s23 }
  0x14   : > { %p682_p2 = pneg %p681_p1  ;;  %p686_p5 = por %p685_p4, %p684_p3 }
  0x16   : > { %p688_p8 = por %p687_p6, %p686_p5 }
  0x18   : > { %p689_p11 = pnand %p688_p8, %p682_p2 }
  0x1a   : > { %692 = shalt.err (!%p689_p11)
}
  0x1b   : > { %s693_s3 = scalar_lea.vmem %s871_s20, 16  ;;  %s808_s4 = smov [#allocation2]  }
  0x1c   : > { %p694_p13 = scmp.ne.s32.totalorder %s871_s20, %s693_s3  ;;  %s698_s5 = sshll.u32 %s808_s4, 4  ;;  %s699_s5 = int_to_ptr.vmem [resolvable:$false] %s698_s5 }
  0x1d   : > { %s700_s6 = scalar_lea.vmem %s699_s5, 32  ;;  %p701_p9 = scmp.lt.s32.totalorder %s871_s20, %s699_s5 }
  0x1e   : > { %p696_p1 = pnand %p694_p13, %p680_p0  ;;  %p702_p3 = scmp.lt.s32.totalorder %s700_s6, %s693_s3 }
  0x20   : > { %p697_p12 = pneg %p696_p1  ;;  %p703_p4 = por %p702_p3, %p701_p9 }
  0x22   : > { %p704_p5 = pnand %p703_p4, %p697_p12 }
  0x24   : > { %707 = shalt.err (!%p704_p5)
}
  0x25   : > { %565 = dma.hbm_to_vmem [thread:$0]  (!%p873_p10), %s869_s23, 16, %s871_s20, %s85_s25  }
  0x26   : > { %p1060_p11 = scmp.lt.s32.totalorder %s774_s9, 3  ;;  %p1061_p2 = scmp.ge.s32.totalorder %s774_s9, 1 }
  0x28   : > { %p100_p0 = pnand %p1061_p2, %p1060_p11 }
  0x29   : > { %s909_s12 = sand.u32 (!%p100_p0), 1, %s766_s7  }
  0x2a   : > { %103 = sbr.rel (%p100_p0) target bundleno = 316 (0x13c), region = 24  ;;  %s106_s13 = scalar_lea.sflag (!%p100_p0), [#allocation3], %s909_s12 }
  0x2b   : > { %s108_s17 = scalar_lea.vmem (!%p100_p0), [#allocation2], %s909_s12 }
  0x31   : > { %757 = dma.done.wait (%p855_p7), %s106_s13, 16  }
  0x32   : > { %759 = vsyncadd (%p855_p7), %s106_s13, 4294967280  ;;  %v131_v0 = vlaneseq  ;;  %v539_v12 = vld [vmem:[%s108_s17] ss:$0 sm:$0xff]  ;;  %s538_s9 = sshll.u32 %s909_s12, 7  ;;  %vm233_vm0 = vcmask 408576   ;;  %p1062_p7 = scmp.ne.s32.totalorder %s1058_s16, 0 }
  0x33   : > { %s918_s15 = scalar_lea.vmem [#allocation4], %s538_s9   ;;  %s541_s18 = sshll.u32 (%p1062_p7), %s838_s10, 4 }
  0x34   : > { %v132_v1 = vshrl.u32 %v131_v0, 7  ;;  %s557_s19 = sshll.u32 (%p1062_p7), %s838_s10, 7  ;;  %s258_s20 = ssub.s32 (%p1062_p7), 25, %s541_s18 }
  0x35   : > { %s959_s23 = scalar_lea.vmem (%p1062_p7), %s1056_s1, %s557_s19   ;;  %p259_p9 = scmp.lt.s32.totalorder (%p1062_p7), %s258_s20, 16 }
  0x36   : > { %v139_v2 = vcvt.s32.f32 %v132_v1  ;;  %v133_v3 = vadd.s32 8, %v132_v1  ;;  %v134_v4 = vadd.s32 16, %v132_v1  ;;  %v135_v5 = vadd.s32 24, %v132_v1 }
  0x37   : > { %v136_v6 = vadd.s32 32, %v132_v1  ;;  %v137_v7 = vadd.s32 40, %v132_v1  ;;  %v138_v20 = vadd.s32 48, %v132_v1 }
  0x38   : > { %v146_v8 = vmul.f32 0.10204082, %v139_v2  ;;  %v140_v9 = vcvt.s32.f32 %v133_v3  ;;  %v141_v10 = vcvt.s32.f32 %v134_v4  ;;  %v142_v11 = vcvt.s32.f32 %v135_v5 }
  0x39   : > { %v143_v13 = vcvt.s32.f32 %v136_v6  ;;  %v144_v19 = vcvt.s32.f32 %v137_v7  ;;  %v145_v30 = vcvt.s32.f32 %v138_v20 }
  0x3a   : > { %v166_v14 = vsub.f32 %v539_v12, %v146_v8  ;;  %v147_v15 = vmul.f32 0.10204082, %v140_v9  ;;  %v148_v16 = vmul.f32 0.10204082, %v141_v10  ;;  %v149_v17 = vmul.f32 0.10204082, %v142_v11 }
  0x3b   : > { %v150_v18 = vmul.f32 0.10204082, %v143_v13  ;;  %v151_v29 = vmul.f32 0.10204082, %v144_v19  ;;  %v152_v37 = vmul.f32 0.10204082, %v145_v30 }
  0x3c   : > { %v173_v21 = vmul.f32 %v166_v14, %v166_v14  ;;  %v167_v22 = vsub.f32 %v539_v12, %v147_v15  ;;  %v168_v23 = vsub.f32 %v539_v12, %v148_v16  ;;  %v169_v24 = vsub.f32 %v539_v12, %v149_v17 }
  0x3d   : > { %v170_v28 = vsub.f32 %v539_v12, %v150_v18  ;;  %v171_v36 = vsub.f32 %v539_v12, %v151_v29  ;;  %v172_v41 = vsub.f32 %v539_v12, %v152_v37 }
  0x3e   : > { %v180_v25 = vmul.f32 -48.02, %v173_v21  ;;  %v174_v26 = vmul.f32 %v167_v22, %v167_v22  ;;  %v175_v27 = vmul.f32 %v168_v23, %v168_v23  ;;  %v176_v34 = vmul.f32 %v169_v24, %v169_v24 }
  0x3f   : > { %v177_v40 = vmul.f32 %v170_v28, %v170_v28  ;;  %v178_v44 = vmul.f32 %v171_v36, %v171_v36  ;;  %v179_v48 = vmul.f32 %v172_v41, %v172_v41 }
  0x40   : > { %v187_v31 = vmul.f32 1.442695, %v180_v25  ;;  %v181_v32 = vmul.f32 -48.02, %v174_v26  ;;  %v182_v33 = vmul.f32 -48.02, %v175_v27 }
  0x41   : > { %v183_v39 = vmul.f32 -48.02, %v176_v34  ;;  %v184_v43 = vmul.f32 -48.02, %v177_v40  ;;  %v185_v47 = vmul.f32 -48.02, %v178_v44 }
  0x42   : > { %664 = vpow2.f32 %v187_v31  ;;  %v189_v35 = vmul.f32 1.442695, %v181_v32  ;;  %v191_v38 = vmul.f32 1.442695, %v182_v33  ;;  %v186_v51 = vmul.f32 -48.02, %v179_v48 }
  0x43   : > { %v193_v42 = vmul.f32 1.442695, %v183_v39  ;;  %v195_v46 = vmul.f32 1.442695, %v184_v43  ;;  %v197_v50 = vmul.f32 1.442695, %v185_v47 }
  0x44   : > { %666 = vpow2.f32 %v189_v35  ;;  %v199_v53 = vmul.f32 1.442695, %v186_v51 }
  0x45   : > { %668 = vpow2.f32 %v191_v38 }
  0x46   : > { %670 = vpow2.f32 %v193_v42 }
  0x47   : > { %672 = vpow2.f32 %v195_v46 }
  0x48   : > { %674 = vpow2.f32 %v197_v50 }
  0x49   : > { %676 = vpow2.f32 %v199_v53 }
  0x4c   : > { %v665_v45 = vpop.eup %664 }
  0x4d   : > { %201 = vxpose.xlu0.b32.start [1/7] (short) %v665_v45, 128 }
  0x4e   : > { %v667_v49 = vpop.eup %666 }
  0x4f   : > { %v669_v52 = vpop.eup %668 }
  0x50   : > { %v671_v54 = vpop.eup %670 }
  0x51   : > { %202 = vxpose.xlu0.b32.cont [2/7] (short) %v667_v49, 128  ;;  %v673_v55 = vpop.eup %672 }
  0x52   : > { %v675_v56 = vpop.eup %674 }
  0x53   : > { %v677_v57 = vpop.eup %676 }
  0x55   : > { %203 = vxpose.xlu0.b32.cont [3/7] (short) %v669_v52, 128 }
  0x59   : > { %204 = vxpose.xlu0.b32.cont [4/7] (short) %v671_v54, 128 }
  0x5d   : > { %205 = vxpose.xlu0.b32.cont [5/7] (short) %v673_v55, 128 }
  0x61   : > { %206 = vxpose.xlu0.b32.cont [6/7] (short) %v675_v56, 128 }
  0x65   : > { %207 = vxpose.xlu0.b32.end [7/7] (short) %v677_v57, 128 }
  0xcd   : > { %v217_v58 = vpop.trf.xlu0 }
  0xce   : > { %234 = vst.msk [vmem:[%s918_s15] sm:$0xff] %vm233_vm0, %v217_v58 }
  0xd1   : > { %v218_v59 = vpop.trf.xlu0 }
  0xd2   : > { %235 = vst.msk [vmem:[%s918_s15 + $0x8] sm:$0xff] %vm233_vm0, %v218_v59 }
  0xd5   : > { %v219_v60 = vpop.trf.xlu0 }
  0xd6   : > { %236 = vst.msk [vmem:[%s918_s15 + $0x10] sm:$0xff] %vm233_vm0, %v219_v60 }
  0xd9   : > { %v220_v61 = vpop.trf.xlu0 }
  0xda   : > { %237 = vst.msk [vmem:[%s918_s15 + $0x18] sm:$0xff] %vm233_vm0, %v220_v61 }
  0xdd   : > { %v221_v62 = vpop.trf.xlu0 }
  0xde   : > { %238 = vst.msk [vmem:[%s918_s15 + $0x20] sm:$0xff] %vm233_vm0, %v221_v62 }
  0xe1   : > { %v222_v63 = vpop.trf.xlu0 }
  0xe2   : > { %239 = vst.msk [vmem:[%s918_s15 + $0x28] sm:$0xff] %vm233_vm0, %v222_v63 }
  0xe5   : > { %v223_v0 = vpop.trf.xlu0 }
  0xe6   : > { %240 = vst.msk [vmem:[%s918_s15 + $0x30] sm:$0xff] %vm233_vm0, %v223_v0 }
  0xe9   : > { %v224_v1 = vpop.trf.xlu0 }
  0xea   : > { %241 = vst.msk [vmem:[%s918_s15 + $0x38] sm:$0xff] %vm233_vm0, %v224_v1 }
  0xed   : > { %v225_v2 = vpop.trf.xlu0 }
  0xee   : > { %242 = vst.msk [vmem:[%s918_s15 + $0x40] sm:$0xff] %vm233_vm0, %v225_v2 }
  0xf1   : > { %v226_v3 = vpop.trf.xlu0 }
  0xf2   : > { %243 = vst.msk [vmem:[%s918_s15 + $0x48] sm:$0xff] %vm233_vm0, %v226_v3 }
  0xf5   : > { %v227_v4 = vpop.trf.xlu0 }
  0xf6   : > { %244 = vst.msk [vmem:[%s918_s15 + $0x50] sm:$0xff] %vm233_vm0, %v227_v4 }
  0xf9   : > { %v228_v5 = vpop.trf.xlu0 }
  0xfa   : > { %245 = vst.msk [vmem:[%s918_s15 + $0x58] sm:$0xff] %vm233_vm0, %v228_v5 }
  0xfd   : > { %v229_v6 = vpop.trf.xlu0 }
  0xfe   : > { %246 = vst.msk [vmem:[%s918_s15 + $0x60] sm:$0xff] %vm233_vm0, %v229_v6 }
 0x101   : > { %v230_v7 = vpop.trf.xlu0 }
 0x102   : > { %247 = vst.msk [vmem:[%s918_s15 + $0x68] sm:$0xff] %vm233_vm0, %v230_v7 }
 0x104   : > { %256 = sbr.rel (!%p1062_p7) target bundleno = 316 (0x13c), region = 32 }
 0x105   : > { %v231_v8 = vpop.trf.xlu0 }
 0x106   : > { %248 = vst.msk [vmem:[%s918_s15 + $0x70] sm:$0xff] %vm233_vm0, %v231_v8 }
 0x109   : > { %v232_v9 = vpop.trf.xlu0 }
 0x10a   : > { %249 = vst.msk [vmem:[%s918_s15 + $0x78] sm:$0xff] %vm233_vm0, %v232_v9 }
 0x10b   : > { %s1071_s20 = smov (!%p259_p9, %s258_s20), 16 }
 0x10c   : > { %s542_s24 = sshll.u32 %s1071_s20, 7 }
 0x10d   : > { %p545_p10 = scmp.eq.s32.totalorder %s542_s24, 0 }
 0x10e   : > { %s965_s16 = sshrl.u32 (!%p545_p10), %s1071_s20, 4 }
 0x10f   : > { %267 = sbr.rel (%p545_p10) target bundleno = 316 (0x13c), region = 36  ;;  %p546_p12 = scmp.le.s32.totalorder (!%p545_p10), %s965_s16, 0 }
 0x116   : > { %486 = sbr.rel (%p546_p12) target bundleno = 295 (0x127), region = 118  ;;  %s1063_s10 = smov (!%p546_p12), %s959_s23 }
 0x117   : > { %s1064_s25 = smov (!%p546_p12), %s918_s15  ;;  %s974_s26 = smov (!%p546_p12), 0  }
 0x118   : > { %s976_s27 = smov (!%p546_p12), 0  }
 0x11d LB: >> { %v359_v10 = vld [vmem:[%s782_s25] sm:$0xff]  ;;  %v361_v11 = vld [vmem:[%s782_s25 + $0x8] sm:$0xff]  ;;  %v363_v12 = vld [vmem:[%s782_s25 + $0x10] sm:$0xff]  ;;  %s391_s28 = sadd.s32 1, %s786_s26  ;;  %s353_s27 = sadd.s32 1, %s790_s27   ;;  %s790_s27 = sphi %s976_s27, %s353_s27   ;;  %s786_s26 = sphi %s974_s26, %s1065_s26   ;;  %s782_s25 = sphi %s1064_s25, %s396_s25   ;;  %s778_s10 = sphi %s1063_s10, %s397_s10  }
 0x11e   : >> { %360 = vst [vmem:[%s778_s10] sm:$0xff] %v359_v10  ;;  %362 = vst [vmem:[%s778_s10 + $0x8] sm:$0xff] %v361_v11  ;;  %v365_v13 = vld [vmem:[%s782_s25 + $0x18] sm:$0xff]  ;;  %v367_v14 = vld [vmem:[%s782_s25 + $0x20] sm:$0xff]  ;;  %p392_p6 = scmp.ge.s32.totalorder %s391_s28, %s965_s16  ;;  %p352_p8 = scmp.ge.s32.totalorder %s353_s27, %s965_s16 }
 0x11f   : >> { %364 = vst [vmem:[%s778_s10 + $0x10] sm:$0xff] %v363_v12  ;;  %v369_v15 = vld [vmem:[%s782_s25 + $0x28] sm:$0xff]  ;;  %366 = vst [vmem:[%s778_s10 + $0x18] sm:$0xff] %v365_v13  ;;  %v371_v16 = vld [vmem:[%s782_s25 + $0x30] sm:$0xff] }
 0x120   : >> { %368 = vst [vmem:[%s778_s10 + $0x20] sm:$0xff] %v367_v14  ;;  %370 = vst [vmem:[%s778_s10 + $0x28] sm:$0xff] %v369_v15  ;;  %v373_v17 = vld [vmem:[%s782_s25 + $0x38] sm:$0xff]  ;;  %v375_v18 = vld [vmem:[%s782_s25 + $0x40] sm:$0xff]  ;;  %s1073_s28 = smov (%p392_p6, %s391_s28), 0  ;;  %355 = sbr.rel (!%p352_p8) target bundleno = 285 (0x11d), region = 124 }
 0x121   : >> { %372 = vst [vmem:[%s778_s10 + $0x30] sm:$0xff] %v371_v16  ;;  %374 = vst [vmem:[%s778_s10 + $0x38] sm:$0xff] %v373_v17  ;;  %v377_v19 = vld [vmem:[%s782_s25 + $0x48] sm:$0xff]  ;;  %v379_v20 = vld [vmem:[%s782_s25 + $0x50] sm:$0xff]  ;;  %s547_s29 = sshll.u32 %s1073_s28, 7  ;;  %s1065_s26 = smov %s1073_s28 }
 0x122   : >> { %376 = vst [vmem:[%s778_s10 + $0x40] sm:$0xff] %v375_v18  ;;  %v381_v21 = vld [vmem:[%s782_s25 + $0x58] sm:$0xff]  ;;  %378 = vst [vmem:[%s778_s10 + $0x48] sm:$0xff] %v377_v19  ;;  %v383_v22 = vld [vmem:[%s782_s25 + $0x60] sm:$0xff] }
 0x123   : >> { %380 = vst [vmem:[%s778_s10 + $0x50] sm:$0xff] %v379_v20  ;;  %382 = vst [vmem:[%s778_s10 + $0x58] sm:$0xff] %v381_v21  ;;  %v385_v23 = vld [vmem:[%s782_s25 + $0x68] sm:$0xff]  ;;  %v387_v24 = vld [vmem:[%s782_s25 + $0x70] sm:$0xff] }
 0x124   : >> { %384 = vst [vmem:[%s778_s10 + $0x60] sm:$0xff] %v383_v22  ;;  %386 = vst [vmem:[%s778_s10 + $0x68] sm:$0xff] %v385_v23  ;;  %v389_v25 = vld [vmem:[%s782_s25 + $0x78] sm:$0xff]  ;;  %s396_s25 = scalar_lea.vmem %s918_s15, %s547_s29 [#allocation4]  }
 0x125   : >> { %388 = vst [vmem:[%s778_s10 + $0x70] sm:$0xff] %v387_v24  ;;  %390 = vst [vmem:[%s778_s10 + $0x78] sm:$0xff] %v389_v25  ;;  %s397_s10 = scalar_lea.vmem %s959_s23, %s547_s29  }
 0x127 PF: > { %s1034_s30 = sand.u32 15, %s1071_s20   ;;  %s558_s2 = sshll.u32 %s965_s16, 7 }
 0x128   : > { %s402_s3 = scalar_lea.vmem %s918_s15, %s558_s2 [#allocation4]   ;;  %s404_s4 = scalar_lea.vmem %s959_s23, %s558_s2  }
 0x129   : > { %p552_p13 = scmp.le.s32.totalorder %s1034_s30, 0 }
 0x12a   : > { %s792_s5 = smov (!%p552_p13), %s404_s4   ;;  %s796_s6 = smov (!%p552_p13), %s402_s3  }
 0x12b   : > { %500 = sbr.rel (%p552_p13) target bundleno = 316 (0x13c), region = 129  ;;  %s800_s12 = smov (!%p552_p13), 0  }
 0x12c   : > { %s804_s13 = smov (!%p552_p13), 0  }
 0x132 LB: >> { %v414_v26 = vld [vmem:[%s798_s6] sm:$0xff]  ;;  %s416_s17 = sadd.s32 1, %s802_s12  ;;  %s408_s13 = sadd.s32 1, %s806_s13   ;;  %s806_s13 = sphi %s804_s13, %s408_s13   ;;  %s802_s12 = sphi %s800_s12, %s801_s12   ;;  %s798_s6 = sphi %s796_s6, %s421_s6   ;;  %s794_s5 = sphi %s792_s5, %s422_s5  }
 0x133   : >> { %415 = vst [vmem:[%s794_s5] sm:$0xff] %v414_v26  ;;  %p417_p1 = scmp.ge.s32.totalorder %s416_s17, %s1034_s30  ;;  %p407_p3 = scmp.ge.s32.totalorder %s408_s13, %s1034_s30 }
 0x135   : >> { %s1075_s17 = smov (%p417_p1, %s416_s17), 0  ;;  %410 = sbr.rel (!%p407_p3) target bundleno = 306 (0x132), region = 135 }
 0x136   : >> { %s553_s9 = sshll.u32 %s1075_s17, 3  ;;  %s801_s12 = smov %s1075_s17  }
 0x137   : >> { %s421_s6 = scalar_lea.vmem %s402_s3, %s553_s9 [#allocation4]   ;;  %s422_s5 = scalar_lea.vmem %s404_s4, %s553_s9  }
 0x13c PF: > { %p11_p4 = scmp.ge.s32.totalorder %s841_s11, 4   ;;  %s1066_s6 = smov %s766_s7 }
 0x13d   : > { %s1067_s7 = smov %s770_s8  ;;  %s1068_s8 = smov %s851_s14 }
 0x13e   : > { %s1069_s9 = smov %s841_s11  ;;  %13 = sbr.rel (!%p11_p4) target bundleno = 3 (0x3), region = 146 }
 0x145   :  { %438 = vsyncpa [#allocation3], 1 }
 0x146   :  { %440 = vsyncpa [#allocation3 + $0x1], 1 }

// kernel: tpu_custom_call.1
= control target key start
LH: loop header
LB: loop body
LE: loop exit
PB: predicated region body
PF: predicated region fallthrough
CT: control target
= control target key end

     0   :  { %s860_s6 = smov 0   ;;  %s862_s7 = smov 0   ;;  %s1050_s0 = inlined_call_operand.vmem [shape: f32[200,1], index: 0, kind: input, shape index: {}]   ;;  %s1051_s1 = inlined_call_operand.vmem [shape: f32[200,50], index: 1, kind: output, shape index: {}]  }
   0x1   :  { %s864_s8 = smov 0  }
   0x2 LB: > { %s873_s9 = sadd.s32 4294967295, %s815_s8   ;;  %s875_s10 = sadd.s32 1, %s815_s8   ;;  %s815_s8 = sphi %s864_s8, %s1058_s8   ;;  %s811_s7 = sphi %s862_s7, %s1057_s7   ;;  %s807_s6 = sphi %s860_s6, %s1056_s6  }
   0x3   : > { %s41_s11 = ssub.s32 %s815_s8, %s875_s10  ;;  %s44_s12 = sadd.s32 1, %s811_s7 }
   0x4   : > { %p42_p0 = scmp.eq.s32.totalorder %s41_s11, 0  ;;  %p54_p1 = scmp.ne.s32.totalorder %s811_s7, %s807_s6 }
   0x5   : > { %p55_p2 = scmp.eq.s32.totalorder %s873_s9, 1  ;;  %p614_p3 = scmp.ge.s32.totalorder %s815_s8, 1 }
   0x6   : > { %s883_s13 = scalar_select %p42_p0, %s811_s7, %s44_s12  }
   0x7   : > { %p885_p4 = por %p55_p2, %p54_p1  ;;  %p96_p5 = scmp.lt.s32.totalorder %s815_s8, 3 }
   0x9   : > { %p97_p6 = pnand %p614_p3, %p96_p5 }
   0xa   : > { %s890_s15 = sshll.u32 (!%p97_p6), %s873_s9, 4  ;;  %v849_v0 = vmov (!%p97_p6), 0   ;;  %v138_v17 = vlaneseq (!%p97_p6)  ;;  %s116_s21 = sand.u32 (!%p97_p6), 1, %s807_s6   ;;  %vm319_vm0 = vcmask (!%p97_p6), 408576  }
   0xb   : > { %100 = sbr.rel (%p97_p6) target bundleno = 249 (0xf9), region = 24  ;;  %728 = vset.pattern.permute.xlu1 (!%p97_p6), %v849_v0  ;;  %727 = vset.pattern.permute.xlu0 (!%p97_p6), %v849_v0  ;;  %p124_p7 = scmp.lt.s32.totalorder (!%p97_p6), %s890_s15, 24 }
   0xc   : > { %v139_v18 = vand.u32 (!%p97_p6), 127, %v138_v17  ;;  %s615_s22 = sshll.u32 (!%p97_p6), %s116_s21, 7 }
   0xd   : > { %s910_s23 = scalar_lea.vmem (!%p97_p6), [#allocation2], %s615_s22  }
   0xe   : > { %v140_v19 = vcvt.s32.f32 (!%p97_p6), %v139_v18 }
  0x10   : > { %v897_v20 = vmul.f32 (!%p97_p6), 0.10204082, %v140_v19 }
  0x12   : > { %s125_s16 = scalar_select %p124_p7, %s890_s15, 24 }
  0x13   : > { %s344_s24 = ssub.s32 (%p885_p4), 25, %s890_s15  ;;  %s635_s25 = sshll.u32 (%p885_p4), %s873_s9, 7 }
  0x14   : > { %s617_s17 = sshll.u32 %s125_s16, 3  ;;  %p345_p8 = scmp.lt.s32.totalorder (%p885_p4), %s344_s24, 16 }
  0x15   : > { %s127_s20 = scalar_lea.vmem %s1050_s0, %s617_s17  ;;  %s957_s28 = scalar_lea.vmem (%p885_p4), %s1051_s1, %s635_s25  }
  0x16   : > { %v145_v1 = vld [vmem:[%s127_s20 + $0x10] sm:$0xff]  ;;  %v143_v2 = vld [vmem:[%s127_s20] sm:$0xff]  ;;  %v146_v3 = vld [vmem:[%s127_s20 + $0x18] sm:$0xff] }
  0x17   : > { %171 = vperm.xlu1 %728, %v145_v1   ;;  %161 = vperm.xlu0 %727, %v143_v2   ;;  %v144_v4 = vld [vmem:[%s127_s20 + $0x8] sm:$0xff]  ;;  %v147_v6 = vld [vmem:[%s127_s20 + $0x20] sm:$0xff]  ;;  %v150_v7 = vld [vmem:[%s127_s20 + $0x38] sm:$0xff] }
  0x18   : > { %v148_v5 = vld [vmem:[%s127_s20 + $0x28] sm:$0xff]  ;;  %v149_v8 = vld [vmem:[%s127_s20 + $0x30] sm:$0xff]  ;;  %v151_v10 = vld [vmem:[%s127_s20 + $0x40] sm:$0xff] }
  0x19   : > { %v152_v9 = vld [vmem:[%s127_s20 + $0x48] sm:$0xff]  ;;  %v154_v11 = vld [vmem:[%s127_s20 + $0x58] sm:$0xff]  ;;  %v153_v12 = vld [vmem:[%s127_s20 + $0x50] sm:$0xff] }
  0x1a   : > { %v156_v13 = vld [vmem:[%s127_s20 + $0x68] sm:$0xff]  ;;  %v155_v14 = vld [vmem:[%s127_s20 + $0x60] sm:$0xff]  ;;  %v158_v15 = vld [vmem:[%s127_s20 + $0x78] sm:$0xff] }
  0x1b   : > { %176 = vperm.xlu1 %728, %v146_v3   ;;  %166 = vperm.xlu0 %727, %v144_v4   ;;  %v157_v16 = vld [vmem:[%s127_s20 + $0x70] sm:$0xff] }
  0x1f   : > { %186 = vperm.xlu1 %728, %v148_v5   ;;  %181 = vperm.xlu0 %727, %v147_v6  }
  0x23   : > { %196 = vperm.xlu1 %728, %v150_v7   ;;  %191 = vperm.xlu0 %727, %v149_v8  }
  0x27   : > { %206 = vperm.xlu1 %728, %v152_v9   ;;  %201 = vperm.xlu0 %727, %v151_v10  }
  0x2b   : > { %216 = vperm.xlu1 %728, %v154_v11   ;;  %211 = vperm.xlu0 %727, %v153_v12  }
  0x2f   : > { %226 = vperm.xlu1 %728, %v156_v13   ;;  %221 = vperm.xlu0 %727, %v155_v14  }
  0x33   : > { %236 = vperm.xlu1 %728, %v158_v15   ;;  %231 = vperm.xlu0 %727, %v157_v16  }
  0x96   : > { %v172_v21 = vpop.permute.xlu1 %171  ;;  %v162_v22 = vpop.permute.xlu0 %161 }
  0x97   : > { %v241_v23 = vsub.f32 %v172_v21, %v897_v20  ;;  %v239_v24 = vsub.f32 %v162_v22, %v897_v20 }
  0x99   : > { %v257_v25 = vmul.f32 %v241_v23, %v241_v23  ;;  %v255_v26 = vmul.f32 %v239_v24, %v239_v24 }
  0x9a   : > { %v177_v27 = vpop.permute.xlu1 %176  ;;  %v167_v28 = vpop.permute.xlu0 %166 }
  0x9b   : > { %v273_v29 = vmul.f32 -48.02, %v257_v25  ;;  %v271_v30 = vmul.f32 -48.02, %v255_v26  ;;  %v242_v31 = vsub.f32 %v177_v27, %v897_v20  ;;  %v240_v32 = vsub.f32 %v167_v28, %v897_v20 }
  0x9d   : > { %v291_v33 = vmul.f32 1.442695, %v273_v29  ;;  %v287_v34 = vmul.f32 1.442695, %v271_v30  ;;  %v258_v35 = vmul.f32 %v242_v31, %v242_v31  ;;  %v256_v36 = vmul.f32 %v240_v32, %v240_v32 }
  0x9e   : > { %v187_v37 = vpop.permute.xlu1 %186  ;;  %v182_v38 = vpop.permute.xlu0 %181 }
  0x9f   : > { %729 = vpow2.f32 %v291_v33  ;;  %v274_v39 = vmul.f32 -48.02, %v258_v35  ;;  %v272_v40 = vmul.f32 -48.02, %v256_v36  ;;  %v244_v41 = vsub.f32 %v187_v37, %v897_v20 }
  0xa0   : > { %731 = vpow2.f32 %v287_v34  ;;  %v243_v42 = vsub.f32 %v182_v38, %v897_v20 }
  0xa1   : > { %v293_v43 = vmul.f32 1.442695, %v274_v39  ;;  %v289_v44 = vmul.f32 1.442695, %v272_v40  ;;  %v260_v45 = vmul.f32 %v244_v41, %v244_v41 }
  0xa2   : > { %v259_v46 = vmul.f32 %v243_v42, %v243_v42  ;;  %v197_v47 = vpop.permute.xlu1 %196  ;;  %v192_v48 = vpop.permute.xlu0 %191 }
  0xa3   : > { %733 = vpow2.f32 %v293_v43  ;;  %v276_v49 = vmul.f32 -48.02, %v260_v45  ;;  %v246_v50 = vsub.f32 %v197_v47, %v897_v20  ;;  %v245_v51 = vsub.f32 %v192_v48, %v897_v20 }
  0xa4   : > { %735 = vpow2.f32 %v289_v44  ;;  %v275_v52 = vmul.f32 -48.02, %v259_v46 }
  0xa5   : > { %v297_v53 = vmul.f32 1.442695, %v276_v49  ;;  %v262_v54 = vmul.f32 %v246_v50, %v246_v50  ;;  %v261_v55 = vmul.f32 %v245_v51, %v245_v51 }
  0xa6   : > { %v295_v56 = vmul.f32 1.442695, %v275_v52  ;;  %v207_v57 = vpop.permute.xlu1 %206  ;;  %v202_v58 = vpop.permute.xlu0 %201 }
  0xa7   : > { %737 = vpow2.f32 %v297_v53  ;;  %v278_v59 = vmul.f32 -48.02, %v262_v54  ;;  %v277_v60 = vmul.f32 -48.02, %v261_v55  ;;  %v248_v61 = vsub.f32 %v207_v57, %v897_v20 }
  0xa8   : > { %739 = vpow2.f32 %v295_v56  ;;  %v247_v62 = vsub.f32 %v202_v58, %v897_v20 }
  0xa9   : > { %v730_v63 = vpop.eup %729  ;;  %v301_v0 = vmul.f32 1.442695, %v278_v59  ;;  %v299_v1 = vmul.f32 1.442695, %v277_v60  ;;  %v264_v2 = vmul.f32 %v248_v61, %v248_v61 }
  0xaa   : > { %v732_v3 = vpop.eup %731  ;;  %322 = vst.msk [vmem:[%s910_s23 + $0x10] sm:$0xff] %vm319_vm0, %v730_v63  ;;  %v263_v4 = vmul.f32 %v247_v62, %v247_v62  ;;  %v217_v5 = vpop.permute.xlu1 %216 }
  0xab   : > { %v212_v6 = vpop.permute.xlu0 %211  ;;  %320 = vst.msk [vmem:[%s910_s23] sm:$0xff] %vm319_vm0, %v732_v3  ;;  %741 = vpow2.f32 %v301_v0  ;;  %v280_v7 = vmul.f32 -48.02, %v264_v2  ;;  %v250_v8 = vsub.f32 %v217_v5, %v897_v20 }
  0xac   : > { %v249_v9 = vsub.f32 %v212_v6, %v897_v20  ;;  %743 = vpow2.f32 %v299_v1  ;;  %v279_v10 = vmul.f32 -48.02, %v263_v4 }
  0xad   : > { %v734_v11 = vpop.eup %733  ;;  %v305_v12 = vmul.f32 1.442695, %v280_v7  ;;  %v266_v13 = vmul.f32 %v250_v8, %v250_v8 }
  0xae   : > { %v265_v14 = vmul.f32 %v249_v9, %v249_v9  ;;  %v736_v15 = vpop.eup %735  ;;  %323 = vst.msk [vmem:[%s910_s23 + $0x18] sm:$0xff] %vm319_vm0, %v734_v11  ;;  %v303_v16 = vmul.f32 1.442695, %v279_v10  ;;  %v227_v17 = vpop.permute.xlu1 %226 }
  0xaf   : > { %v222_v18 = vpop.permute.xlu0 %221  ;;  %321 = vst.msk [vmem:[%s910_s23 + $0x8] sm:$0xff] %vm319_vm0, %v736_v15  ;;  %745 = vpow2.f32 %v305_v12  ;;  %v282_v19 = vmul.f32 -48.02, %v266_v13  ;;  %v252_v22 = vsub.f32 %v227_v17, %v897_v20 }
  0xb0   : > { %v281_v21 = vmul.f32 -48.02, %v265_v14  ;;  %747 = vpow2.f32 %v303_v16  ;;  %v251_v23 = vsub.f32 %v222_v18, %v897_v20 }
  0xb1   : > { %v738_v24 = vpop.eup %737  ;;  %v309_v25 = vmul.f32 1.442695, %v282_v19  ;;  %v268_v27 = vmul.f32 %v252_v22, %v252_v22 }
  0xb2   : > { %v307_v26 = vmul.f32 1.442695, %v281_v21  ;;  %v740_v28 = vpop.eup %739  ;;  %325 = vst.msk [vmem:[%s910_s23 + $0x28] sm:$0xff] %vm319_vm0, %v738_v24  ;;  %v267_v29 = vmul.f32 %v251_v23, %v251_v23  ;;  %v237_v30 = vpop.permute.xlu1 %236 }
  0xb3   : > { %v232_v31 = vpop.permute.xlu0 %231  ;;  %324 = vst.msk [vmem:[%s910_s23 + $0x20] sm:$0xff] %vm319_vm0, %v740_v28  ;;  %749 = vpow2.f32 %v309_v25  ;;  %v284_v32 = vmul.f32 -48.02, %v268_v27  ;;  %v254_v33 = vsub.f32 %v237_v30, %v897_v20 }
  0xb4   : > { %v253_v34 = vsub.f32 %v232_v31, %v897_v20  ;;  %751 = vpow2.f32 %v307_v26  ;;  %v283_v35 = vmul.f32 -48.02, %v267_v29 }
  0xb5   : > { %v742_v36 = vpop.eup %741  ;;  %v313_v37 = vmul.f32 1.442695, %v284_v32  ;;  %v270_v38 = vmul.f32 %v254_v33, %v254_v33 }
  0xb6   : > { %v269_v39 = vmul.f32 %v253_v34, %v253_v34  ;;  %v744_v40 = vpop.eup %743  ;;  %327 = vst.msk [vmem:[%s910_s23 + $0x38] sm:$0xff] %vm319_vm0, %v742_v36  ;;  %v311_v41 = vmul.f32 1.442695, %v283_v35 }
  0xb7   : > { %326 = vst.msk [vmem:[%s910_s23 + $0x30] sm:$0xff] %vm319_vm0, %v744_v40  ;;  %753 = vpow2.f32 %v313_v37  ;;  %v286_v42 = vmul.f32 -48.02, %v270_v38 }
  0xb8   : > { %v285_v43 = vmul.f32 -48.02, %v269_v39  ;;  %755 = vpow2.f32 %v311_v41 }
  0xb9   : > { %v746_v20 = vpop.eup %745  ;;  %v317_v44 = vmul.f32 1.442695, %v286_v42 }
  0xba   : > { %v315_v45 = vmul.f32 1.442695, %v285_v43  ;;  %v748_v46 = vpop.eup %747  ;;  %329 = vst.msk [vmem:[%s910_s23 + $0x48] sm:$0xff] %vm319_vm0, %v746_v20 }
  0xbb   : > { %328 = vst.msk [vmem:[%s910_s23 + $0x40] sm:$0xff] %vm319_vm0, %v748_v46  ;;  %757 = vpow2.f32 %v317_v44 }
  0xbc   : > { %759 = vpow2.f32 %v315_v45 }
  0xbd   : > { %v750_v47 = vpop.eup %749 }
  0xbe   : > { %v752_v48 = vpop.eup %751  ;;  %331 = vst.msk [vmem:[%s910_s23 + $0x58] sm:$0xff] %vm319_vm0, %v750_v47 }
  0xbf   : > { %330 = vst.msk [vmem:[%s910_s23 + $0x50] sm:$0xff] %vm319_vm0, %v752_v48 }
  0xc1   : > { %v754_v49 = vpop.eup %753  ;;  %342 = sbr.rel (!%p885_p4) target bundleno = 249 (0xf9), region = 28 }
  0xc2   : > { %v756_v50 = vpop.eup %755  ;;  %333 = vst.msk [vmem:[%s910_s23 + $0x68] sm:$0xff] %vm319_vm0, %v754_v49 }
  0xc3   : > { %332 = vst.msk [vmem:[%s910_s23 + $0x60] sm:$0xff] %vm319_vm0, %v756_v50 }
  0xc5   : > { %v758_v51 = vpop.eup %757 }
  0xc6   : > { %v760_v52 = vpop.eup %759  ;;  %335 = vst.msk [vmem:[%s910_s23 + $0x78] sm:$0xff] %vm319_vm0, %v758_v51 }
  0xc7   : > { %334 = vst.msk [vmem:[%s910_s23 + $0x70] sm:$0xff] %vm319_vm0, %v760_v52 }
  0xc8   : > { %s1060_s24 = smov (!%p345_p8, %s344_s24), 16 }
  0xc9   : > { %s620_s29 = sshll.u32 %s1060_s24, 7 }
  0xca   : > { %p623_p9 = scmp.eq.s32.totalorder %s620_s29, 0 }
  0xcb   : > { %s963_s30 = sshrl.u32 (!%p623_p9), %s1060_s24, 4 }
  0xcc   : > { %353 = sbr.rel (%p623_p9) target bundleno = 249 (0xf9), region = 32  ;;  %p624_p10 = scmp.le.s32.totalorder (!%p623_p9), %s963_s30, 0 }
  0xd3   : > { %567 = sbr.rel (%p624_p10) target bundleno = 228 (0xe4), region = 108  ;;  %s1053_s2 = smov (!%p624_p10), %s957_s28 }
  0xd4   : > { %s1054_s3 = smov (!%p624_p10), %s910_s23  ;;  %s972_s4 = smov (!%p624_p10), 0  }
  0xd5   : > { %s974_s5 = smov (!%p624_p10), 0  }
  0xda LB: >> { %v445_v53 = vld [vmem:[%s823_s3] sm:$0xff]  ;;  %v447_v54 = vld [vmem:[%s823_s3 + $0x8] sm:$0xff]  ;;  %v449_v55 = vld [vmem:[%s823_s3 + $0x10] sm:$0xff]  ;;  %s477_s6 = sadd.s32 1, %s827_s4  ;;  %s439_s5 = sadd.s32 1, %s831_s5   ;;  %s831_s5 = sphi %s974_s5, %s439_s5   ;;  %s827_s4 = sphi %s972_s4, %s1055_s4   ;;  %s823_s3 = sphi %s1054_s3, %s482_s3   ;;  %s819_s2 = sphi %s1053_s2, %s483_s2  }
  0xdb   : >> { %446 = vst [vmem:[%s819_s2] sm:$0xff] %v445_v53  ;;  %448 = vst [vmem:[%s819_s2 + $0x8] sm:$0xff] %v447_v54  ;;  %v451_v56 = vld [vmem:[%s823_s3 + $0x18] sm:$0xff]  ;;  %v453_v57 = vld [vmem:[%s823_s3 + $0x20] sm:$0xff]  ;;  %p478_p11 = scmp.ge.s32.totalorder %s477_s6, %s963_s30  ;;  %p438_p12 = scmp.ge.s32.totalorder %s439_s5, %s963_s30 }
  0xdc   : >> { %450 = vst [vmem:[%s819_s2 + $0x10] sm:$0xff] %v449_v55  ;;  %v455_v58 = vld [vmem:[%s823_s3 + $0x28] sm:$0xff]  ;;  %452 = vst [vmem:[%s819_s2 + $0x18] sm:$0xff] %v451_v56  ;;  %v457_v59 = vld [vmem:[%s823_s3 + $0x30] sm:$0xff] }
  0xdd   : >> { %454 = vst [vmem:[%s819_s2 + $0x20] sm:$0xff] %v453_v57  ;;  %456 = vst [vmem:[%s819_s2 + $0x28] sm:$0xff] %v455_v58  ;;  %v459_v60 = vld [vmem:[%s823_s3 + $0x38] sm:$0xff]  ;;  %v461_v61 = vld [vmem:[%s823_s3 + $0x40] sm:$0xff]  ;;  %s1062_s6 = smov (%p478_p11, %s477_s6), 0  ;;  %441 = sbr.rel (!%p438_p12) target bundleno = 218 (0xda), region = 114 }
  0xde   : >> { %458 = vst [vmem:[%s819_s2 + $0x30] sm:$0xff] %v457_v59  ;;  %460 = vst [vmem:[%s819_s2 + $0x38] sm:$0xff] %v459_v60  ;;  %v463_v62 = vld [vmem:[%s823_s3 + $0x48] sm:$0xff]  ;;  %v465_v63 = vld [vmem:[%s823_s3 + $0x50] sm:$0xff]  ;;  %s625_s8 = sshll.u32 %s1062_s6, 7  ;;  %s1055_s4 = smov %s1062_s6 }
  0xdf   : >> { %462 = vst [vmem:[%s819_s2 + $0x40] sm:$0xff] %v461_v61  ;;  %v467_v0 = vld [vmem:[%s823_s3 + $0x58] sm:$0xff]  ;;  %464 = vst [vmem:[%s819_s2 + $0x48] sm:$0xff] %v463_v62  ;;  %v469_v1 = vld [vmem:[%s823_s3 + $0x60] sm:$0xff] }
  0xe0   : >> { %466 = vst [vmem:[%s819_s2 + $0x50] sm:$0xff] %v465_v63  ;;  %468 = vst [vmem:[%s819_s2 + $0x58] sm:$0xff] %v467_v0  ;;  %v471_v2 = vld [vmem:[%s823_s3 + $0x68] sm:$0xff]  ;;  %v473_v3 = vld [vmem:[%s823_s3 + $0x70] sm:$0xff] }
  0xe1   : >> { %470 = vst [vmem:[%s819_s2 + $0x60] sm:$0xff] %v469_v1  ;;  %472 = vst [vmem:[%s819_s2 + $0x68] sm:$0xff] %v471_v2  ;;  %v475_v4 = vld [vmem:[%s823_s3 + $0x78] sm:$0xff]  ;;  %s482_s3 = scalar_lea.vmem %s910_s23, %s625_s8 [#allocation2]  }
  0xe2   : >> { %474 = vst [vmem:[%s819_s2 + $0x70] sm:$0xff] %v473_v3  ;;  %476 = vst [vmem:[%s819_s2 + $0x78] sm:$0xff] %v475_v4  ;;  %s483_s2 = scalar_lea.vmem %s957_s28, %s625_s8  }
  0xe4 PF: > { %s1032_s9 = sand.u32 15, %s1060_s24   ;;  %s636_s11 = sshll.u32 %s963_s30, 7 }
  0xe5   : > { %s488_s12 = scalar_lea.vmem %s910_s23, %s636_s11 [#allocation2]   ;;  %s490_s14 = scalar_lea.vmem %s957_s28, %s636_s11  }
  0xe6   : > { %p630_p13 = scmp.le.s32.totalorder %s1032_s9, 0 }
  0xe7   : > { %s833_s15 = smov (!%p630_p13), %s490_s14   ;;  %s837_s16 = smov (!%p630_p13), %s488_s12  }
  0xe8   : > { %581 = sbr.rel (%p630_p13) target bundleno = 249 (0xf9), region = 119  ;;  %s841_s17 = smov (!%p630_p13), 0  }
  0xe9   : > { %s845_s18 = smov (!%p630_p13), 0  }
  0xef LB: >> { %v500_v5 = vld [vmem:[%s839_s16] sm:$0xff]  ;;  %s502_s19 = sadd.s32 1, %s843_s17  ;;  %s494_s18 = sadd.s32 1, %s847_s18   ;;  %s847_s18 = sphi %s845_s18, %s494_s18   ;;  %s843_s17 = sphi %s841_s17, %s842_s17   ;;  %s839_s16 = sphi %s837_s16, %s507_s16   ;;  %s835_s15 = sphi %s833_s15, %s508_s15  }
  0xf0   : >> { %501 = vst [vmem:[%s835_s15] sm:$0xff] %v500_v5  ;;  %p503_p0 = scmp.ge.s32.totalorder %s502_s19, %s1032_s9  ;;  %p493_p1 = scmp.ge.s32.totalorder %s494_s18, %s1032_s9 }
  0xf2   : >> { %s1064_s19 = smov (%p503_p0, %s502_s19), 0  ;;  %496 = sbr.rel (!%p493_p1) target bundleno = 239 (0xef), region = 125 }
  0xf3   : >> { %s631_s20 = sshll.u32 %s1064_s19, 3  ;;  %s842_s17 = smov %s1064_s19  }
  0xf4   : >> { %s507_s16 = scalar_lea.vmem %s488_s12, %s631_s20 [#allocation2]   ;;  %s508_s15 = scalar_lea.vmem %s490_s14, %s631_s20  }
  0xf9 PF: > { %p8_p2 = scmp.ge.s32.totalorder %s875_s10, 4   ;;  %s1056_s6 = smov %s811_s7 }
  0xfa   : > { %s1057_s7 = smov %s883_s13  ;;  %s1058_s8 = smov %s875_s10 }
  0xfb   :  { %10 = sbr.rel (!%p8_p2) target bundleno = 2 (0x2), region = 136 }

</bundles_post_ra>
